<compile_context>
chip_gen: v7x
topology: tpu7x:2x2x1
jax: 0.10.0
libtpu: 0.0.40
codegen_flags: <defaults>
</compile_context>

<pallas_src>
import functools
import math

import jax
import jax.numpy as jnp
from jax.experimental import pallas as pl
from jax.experimental.pallas import tpu as pltpu


def gat_kernel(h_ref, w_ref, fill_ref, out_ref, *, matmul_dtype):
    # h_ref:    [R, feat]        R = G*nodes rows (G graphs packed per grid step)
    # w_ref:    [feat, out_dim]
    # fill_ref: [R, R] additive-fill sentinels:
    #              0    = within-graph edge (keep score)
    #             -1e16 = within-graph non-edge (PyTorch masked_fill value)
    #             -1e30 = cross-graph pair (exp underflows to exactly 0)
    # out_ref:  [R, out_dim]
    h = h_ref[...].astype(matmul_dtype)
    w = w_ref[...].astype(matmul_dtype)

    # z = h @ W  (MXU, bf16 operands by default, f32 accumulate)
    z = jnp.dot(h, w, preferred_element_type=jnp.float32)                 # [R, O] f32

    # Attention scores z @ z^T without materializing a transpose: contract the
    # shared feature axis (dim 1 of both operands) directly on the MXU.
    zc = z.astype(matmul_dtype)
    att = jax.lax.dot_general(
        zc, zc,
        dimension_numbers=(((1,), (1,)), ((), ())),
        preferred_element_type=jnp.float32,
    )                                                                      # [R, R] f32

    # LeakyReLU(0.1)
    att = jnp.where(att > 0, att, 0.1 * att)

    # Masking in two compare+select pairs:
    #  1) exact-zero scores -> -1e16 (reproduces PyTorch's masked_fill(att==0) quirk,
    #     which after `att * mask` also covers every non-edge),
    #  2) apply the precomputed fill where it is nonzero (non-edges / cross-graph).
    fill = fill_ref[...]
    att = jnp.where(att != 0.0, att, jnp.float32(-1e16))
    att = jnp.where(fill == 0.0, att, fill)

    # Row softmax (each row always contains its own graph's columns, all >= -1e16,
    # so the row max is finite; cross-graph -1e30 entries underflow to exactly 0).
    m = jnp.max(att, axis=-1, keepdims=True)
    p = jnp.exp(att - m)
    s = jnp.sum(p, axis=-1, keepdims=True)

    # Aggregate first, normalize after: scaling the [R, out_dim] result is cheaper
    # than scaling the [R, R] probability matrix.
    acc = jnp.dot(p.astype(matmul_dtype), zc, preferred_element_type=jnp.float32)
    out_ref[...] = (acc * pl.reciprocal(s, approx=False)).astype(out_ref.dtype)


def _pick_group_size(bc, nodes, target_rows=128):
    """Pick G graphs per grid step with R = G*nodes ~ 128.

    R ~= 128 already fills the MXU M dimension / sublane tiling; larger R only
    inflates the O(R^2) score/mask/softmax phase with cross-graph padding and adds
    vreg pressure. Prefer >= 2 grid steps so the megacore scheduler / both v7x
    TensorCores have work.
    """
    divisors = [g for g in range(1, bc + 1) if bc % g == 0]
    cands = [g for g in divisors if bc // g >= 2] or divisors
    for g in cands:                      # smallest candidate reaching the target
        if g * nodes >= target_rows:
            return g
    return cands[-1]


def gat_forward(h, W, mask, *, group_size=None, matmul_dtype=jnp.bfloat16,
                core_parallel=False):
    """h: [bc, nodes, feat], W: [feat, out_dim], mask: [nodes, nodes] 0/1 float.

    matmul_dtype=bfloat16 (default) runs all MXU contractions with bf16 operands and
    f32 accumulation; pass jnp.float32 for bit-level parity with the PyTorch f32 path.
    core_parallel=True switches the batch grid axis to CORE_PARALLEL (v7x, 2 TCs).
    """
    bc, nodes, feat = h.shape
    out_dim = W.shape[1]

    G = _pick_group_size(bc, nodes) if group_size is None else group_size
    assert bc % G == 0, "group_size must divide the batch"
    R = G * nodes
    steps = bc // G

    # Flatten batch*nodes so each grid step sees a [R, feat] row slab (free reshape).
    h2 = h.reshape(bc * nodes, feat)

    # Precomputed additive-fill matrix for G packed graphs:
    #   0 = within-graph edge, -1e16 = within-graph non-edge, -1e30 = cross-graph.
    eyeG = jnp.eye(G, dtype=jnp.float32)
    same_graph = jnp.kron(eyeG, jnp.ones((nodes, nodes), jnp.float32))     # [R, R]
    edges = jnp.kron(eyeG, mask.astype(jnp.float32))                       # [R, R]
    fill_big = jnp.where(same_graph > 0.5,
                         jnp.where(edges > 0.5, 0.0, -1e16),
                         -1e30).astype(jnp.float32)

    # Advisory cost so XLA does not treat the custom call as free.
    flops_per_step = 2 * R * feat * out_dim + 2 * (2 * R * R * out_dim)
    cost = pl.CostEstimate(
        flops=steps * flops_per_step,
        transcendentals=steps * R * R,  # exp
        bytes_accessed=4 * (h2.size + W.size + fill_big.size + bc * nodes * out_dim),
    )

    dim_sem = (pltpu.CORE_PARALLEL,) if core_parallel else ("parallel",)

    out = pl.pallas_call(
        functools.partial(gat_kernel, matmul_dtype=matmul_dtype),
        out_shape=jax.ShapeDtypeStruct((bc * nodes, out_dim), jnp.float32),
        grid_spec=pltpu.PrefetchScalarGridSpec(
            num_scalar_prefetch=0,
            grid=(steps,),
            in_specs=[
                pl.BlockSpec((R, feat), lambda b: (b, 0)),
                # Constant index_maps: W and the fill matrix are DMA'd once and stay
                # VMEM-resident across all grid steps.
                pl.BlockSpec((feat, out_dim), lambda b: (0, 0)),
                pl.BlockSpec((R, R), lambda b: (0, 0)),
            ],
            out_specs=pl.BlockSpec((R, out_dim), lambda b: (b, 0)),
        ),
        compiler_params=pltpu.CompilerParams(
            dimension_semantics=dim_sem,
        ),
        cost_estimate=cost,
    )(h2, W, fill_big)

    # Contiguous (free) reshape back to the module's output layout.
    return out.reshape(bc, nodes, out_dim)


def gat_reference(h, W, mask):
    """Pure-JAX reference mirroring the PyTorch forward exactly (f32)."""
    bc, nodes, feat = h.shape
    out_dim = W.shape[1]
    z = (h.reshape(bc * nodes, feat) @ W).reshape(bc, nodes, out_dim)
    att = jnp.einsum("bnd,bmd->bnm", z, z)
    att = jnp.where(att > 0, att, 0.1 * att)
    att = att * mask[None, :, :]
    att = jnp.where(att == 0.0, -1e16, att)
    att = jax.nn.softmax(att, axis=2)
    return jnp.einsum("bnm,bmd->bnd", att, z)


if __name__ == "__main__":
    # Shapes consistent with the module: bc graphs, nodes per graph,
    # feat = seq_len * feature input dim, out_dim output dim.
    bc = 32
    nodes = 8
    seq_len, feature = 4, 8
    feat = seq_len * feature          # input_dim = 32
    out_dim = 16                      # output_dim

    key = jax.random.PRNGKey(0)
    k_h, k_w, k_adj = jax.random.split(key, 3)

    # input h: [bc, nodes, seq_len*feature]
    h = jax.random.normal(k_h, (bc, nodes, feat), dtype=jnp.float32)

    # W: xavier_normal_ with gain=1.414 (deterministic via PRNGKey).
    gain = 1.414
    std_w = gain * math.sqrt(2.0 / (feat + out_dim))
    W = std_w * jax.random.normal(k_w, (feat, out_dim), dtype=jnp.float32)
    # (atten_W exists in __init__ but is unused by the innerprod forward path.)

    # Deterministic synthetic adjacency (dense 0/1 mask) incl. self loops.
    adj_dense = (jax.random.uniform(k_adj, (nodes, nodes)) > 0.5).astype(jnp.float32)
    mask = jnp.maximum(adj_dense, jnp.eye(nodes, dtype=jnp.float32))

    ref = gat_reference(h, W, mask)

    # f32 path: exact parity with the PyTorch reference (incl. the ==0 quirk).
    out_f32 = jax.block_until_ready(gat_forward(h, W, mask, matmul_dtype=jnp.float32))
    assert out_f32.shape == (bc, nodes, out_dim)
    assert jnp.allclose(out_f32, ref, atol=1e-4, rtol=1e-4), "f32 mismatch vs reference"

    # Default bf16 path: MXU-friendly operands, f32 accumulation; looser tolerance
    # since bf16 rounding of the attention scores perturbs the softmax weights.
    out_bf16 = jax.block_until_ready(gat_forward(h, W, mask))
    assert out_bf16.shape == (bc, nodes, out_dim)
    assert jnp.allclose(out_bf16, ref, atol=5e-1, rtol=5e-2), "bf16 sanity check failed"

    print("KERNEL_OK")
</pallas_src>

<mosaic_0001>
module attributes {stable_mosaic.version = 11 : i64} {
  func.func @gat_kernel(%arg0: i32, %arg1: memref<128x32xf32, #tpu.memory_space<vmem>>, %arg2: memref<32x16xf32, #tpu.memory_space<vmem>>, %arg3: memref<128x128xf32, #tpu.memory_space<vmem>>, %arg4: memref<128x16xf32, #tpu.memory_space<vmem>>) attributes {dimension_semantics = [#tpu.dimension_semantics<parallel>], iteration_bounds = array<i64: 2>, scalar_prefetch = 0 : i64, scratch_operands = 0 : i64, tpu.core_type = #tpu.core_type<tc>, window_params = [{transform_indices = @transform_0, window_bounds = array<i64: 128, 32>}, {pipeline_mode = #tpu.pipeline_mode<synchronous>, transform_indices = @transform_1, window_bounds = array<i64: 32, 16>}, {pipeline_mode = #tpu.pipeline_mode<synchronous>, transform_indices = @transform_2, window_bounds = array<i64: 128, 128>}, {transform_indices = @transform_3, window_bounds = array<i64: 128, 16>}]} {
    %c0 = arith.constant 0 : index
    %c0_0 = arith.constant 0 : index
    %0 = vector.load %arg1[%c0, %c0_0] : memref<128x32xf32, #tpu.memory_space<vmem>>, vector<128x32xf32>
    %c0_1 = arith.constant 0 : index
    %c0_2 = arith.constant 0 : index
    %1 = vector.load %arg2[%c0_1, %c0_2] : memref<32x16xf32, #tpu.memory_space<vmem>>, vector<32x16xf32>
    %cst = arith.constant dense<0.000000e+00> : vector<128x16xf32>
    %2 = tpu.matmul %0, %1, %cst {dimension_numbers = #tpu.dot_dimension_numbers<[1], [0], [0], [1], [0, 0, 1, 1], [], []>} : vector<128x32xf32>, vector<32x16xf32>, vector<128x16xf32> -> vector<128x16xf32>
    %cst_3 = arith.constant dense<0.000000e+00> : vector<128x128xf32>
    %3 = tpu.matmul %2, %2, %cst_3 {dimension_numbers = #tpu.dot_dimension_numbers<[1], [1], [0], [0], [0, 0, 1, 0], [], []>} : vector<128x16xf32>, vector<128x16xf32>, vector<128x128xf32> -> vector<128x128xf32>
    %cst_4 = arith.constant 0.000000e+00 : f32
    %4 = vector.broadcast %cst_4 : f32 to vector<128x128xf32>
    %5 = arith.cmpf ogt, %3, %4 : vector<128x128xf32>
    %cst_5 = arith.constant 1.000000e-01 : f32
    %6 = vector.broadcast %cst_5 : f32 to vector<128x128xf32>
    %7 = arith.mulf %6, %3 : vector<128x128xf32>
    %8 = arith.select %5, %3, %7 : vector<128x128xi1>, vector<128x128xf32>
    %c0_6 = arith.constant 0 : index
    %c0_7 = arith.constant 0 : index
    %9 = vector.load %arg3[%c0_6, %c0_7] : memref<128x128xf32, #tpu.memory_space<vmem>>, vector<128x128xf32>
    %cst_8 = arith.constant 0.000000e+00 : f32
    %10 = vector.broadcast %cst_8 : f32 to vector<128x128xf32>
    %11 = arith.cmpf one, %8, %10 : vector<128x128xf32>
    %cst_9 = arith.constant -1.000000e+16 : f32
    %12 = vector.broadcast %cst_9 : f32 to vector<128x128xf32>
    %13 = arith.select %11, %8, %12 : vector<128x128xi1>, vector<128x128xf32>
    %cst_10 = arith.constant 0.000000e+00 : f32
    %14 = vector.broadcast %cst_10 : f32 to vector<128x128xf32>
    %15 = arith.cmpf oeq, %9, %14 : vector<128x128xf32>
    %16 = arith.select %15, %13, %9 : vector<128x128xi1>, vector<128x128xf32>
    %cst_11 = arith.constant dense<0xFF800000> : vector<128xf32>
    %17 = vector.multi_reduction <maximumf>, %16, %cst_11 [1] : vector<128x128xf32> to vector<128xf32>
    %18 = vector.shape_cast %17 : vector<128xf32> to vector<128x1xf32>
    %19 = vector.broadcast %18 : vector<128x1xf32> to vector<128x128xf32>
    %20 = arith.subf %16, %19 : vector<128x128xf32>
    %21 = math.exp %20 : vector<128x128xf32>
    %cst_12 = arith.constant dense<0.000000e+00> : vector<128xf32>
    %22 = vector.multi_reduction <add>, %21, %cst_12 [1] : vector<128x128xf32> to vector<128xf32>
    %23 = vector.shape_cast %22 : vector<128xf32> to vector<128x1xf32>
    %cst_13 = arith.constant dense<0.000000e+00> : vector<128x16xf32>
    %24 = tpu.matmul %21, %2, %cst_13 {dimension_numbers = #tpu.dot_dimension_numbers<[1], [0], [0], [1], [0, 0, 1, 1], [], []>} : vector<128x128xf32>, vector<128x16xf32>, vector<128x16xf32> -> vector<128x16xf32>
    %25 = tpu.reciprocal %23 : vector<128x1xf32> -> vector<128x1xf32>
    %26 = vector.broadcast %25 : vector<128x1xf32> to vector<128x16xf32>
    %27 = arith.mulf %24, %26 : vector<128x16xf32>
    %c0_14 = arith.constant 0 : index
    %c0_15 = arith.constant 0 : index
    %28 = vector.load %arg4[%c0_14, %c0_15] : memref<128x16xf32, #tpu.memory_space<vmem>>, vector<128x16xf32>
    tpu.vector_store %arg4[%c0_14, %c0_15], %27 {strides = array<i32>} : memref<128x16xf32, #tpu.memory_space<vmem>>, vector<128x16xf32>,
    return
  }
  func.func @transform_0(%arg0: i32) -> (i32, i32) {
    %c0_i32 = arith.constant 0 : i32
    %c0_i32_0 = arith.constant 0 : i32
    return %arg0, %c0_i32 : i32, i32
  }
  func.func @transform_1(%arg0: i32) -> (i32, i32) {
    %c0_i32 = arith.constant 0 : i32
    %c0_i32_0 = arith.constant 0 : i32
    %c0_i32_1 = arith.constant 0 : i32
    return %c0_i32, %c0_i32_0 : i32, i32
  }
  func.func @transform_2(%arg0: i32) -> (i32, i32) {
    %c0_i32 = arith.constant 0 : i32
    %c0_i32_0 = arith.constant 0 : i32
    %c0_i32_1 = arith.constant 0 : i32
    return %c0_i32, %c0_i32_0 : i32, i32
  }
  func.func @transform_3(%arg0: i32) -> (i32, i32) {
    %c0_i32 = arith.constant 0 : i32
    %c0_i32_0 = arith.constant 0 : i32
    return %arg0, %c0_i32 : i32, i32
  }
}

</mosaic_0001>

<bundles_post_ra>
// kernel: tpu_custom_call.1
= control target key start
LH: loop header
LB: loop body
LE: loop exit
PB: predicated region body
PF: predicated region fallthrough
CT: control target
= control target key end

     0   :  { %s1546_s12 = smov 0   ;;  %s1822_s0 = inlined_call_operand.vmem [shape: f32[256,32], index: 0, kind: input, shape index: {}]   ;;  %s1823_s1 = inlined_call_operand.vmem [shape: f32[32,16], index: 1, kind: input, shape index: {}]   ;;  %s1824_s2 = inlined_call_operand.vmem [shape: f32[128,128], index: 2, kind: input, shape index: {}]   ;;  %s1825_s3 = inlined_call_operand.vmem [shape: f32[256,16], index: 3, kind: output, shape index: {}]  }
   0x1 LB: > { %s1071_s13 = sadd.s32 4294967295, %s1524_s12   ;;  %p1075_p0 = scmp.ge.s32.totalorder %s1524_s12, 1  ;;  %s1524_s12 = sphi %s1546_s12, %s13_s12  }
   0x2   : > { %p138_p1 = scmp.lt.s32.totalorder %s1524_s12, 3 }
   0x4   : > { %p139_p2 = pnand %p1075_p0, %p138_p1 }
   0x5   : > { %v190_v0 = vld [vmem:[%s1823_s1] sm:$0xff] (!%p139_p2)  ;;  %v191_v1 = vld [vmem:[%s1823_s1 + $0x8] sm:$0xff] (!%p139_p2)  ;;  %v192_v2 = vld [vmem:[%s1823_s1 + $0x10] sm:$0xff] (!%p139_p2)  ;;  %s1076_s20 = sshll.u32 (!%p139_p2), %s1071_s13, 4  ;;  %vm194_vm0 = vcmask (!%p139_p2), 261120   ;;  %vm388_vm1 = vcmask (!%p139_p2), 130048  }
   0x6   : > { %142 = sbr.rel (%p139_p2) target bundleno = 921 (0x399), region = 32  ;;  %v1358_v3 = vpack.c.bf16 (!%p139_p2), %v191_v1, %v190_v0  ;;  %v193_v4 = vld [vmem:[%s1823_s1 + $0x18] sm:$0xff] (!%p139_p2)  ;;  %p163_p3 = scmp.lt.s32.totalorder (!%p139_p2), %s1076_s20, 31  ;;  %vm1610_vm2 = vmpackc.low (!%p139_p2), %vm388_vm1, %vm388_vm1  ;;  %v630_v50 = vld [vmem:[%s1824_s2] sm:$0xff] (!%p139_p2) }
   0x7   : > { %v1362_v5 = vpack.c.bf16 (!%p139_p2), %v193_v4, %v192_v2  ;;  %vm678_vm5 = vcmp.eq.f32.partialorder (!%p139_p2), %v630_v50, 0.0  ;;  %v631_v55 = vld [vmem:[%s1824_s2 + $0x8] sm:$0xff] (!%p139_p2)  ;;  %v632_v56 = vld [vmem:[%s1824_s2 + $0x10] sm:$0xff] (!%p139_p2)  ;;  %v633_v2 = vld [vmem:[%s1824_s2 + $0x18] sm:$0xff] (!%p139_p2) }
   0x8   : > { %1359 = vmatprep.subr.bf16.mxu0 (!%p139_p2), %v1358_v3  ;;  %vm679_vm10 = vcmp.eq.f32.partialorder (!%p139_p2), %v631_v55, 0.0  ;;  %vm680_vm11 = vcmp.eq.f32.partialorder (!%p139_p2), %v632_v56, 0.0 }
   0x9   : > { %1361 = vmatpush3.bf16.msra.mxu0 (!%p139_p2), %v1358_v3  ;;  %v634_v3 = vld [vmem:[%s1824_s2 + $0x20] sm:$0xff] (!%p139_p2) }
   0xa   : > { %1363 = vmatprep.subr.bf16.mxu0 (!%p139_p2), %v1362_v5 }
   0xd   : > { %s1829_s20 = smov (!%p163_p3, %s1076_s20), 31  ;;  %1365 = vmatpush3.bf16.msra.mxu0 %v1362_v5 }
   0xe   : > { %s1077_s23 = sshll.u32 %s1829_s20, 3 }
   0xf   : > { %s1574_s26 = scalar_lea.vmem %s1822_s0, %s1077_s23  ;;  %s1785_s10 = scalar_lea.vmem %s1825_s3, %s1077_s23 }
  0x10   : > { %v174_v6 = vld [vmem:[%s1574_s26] sm:$0xff]  ;;  %v175_v7 = vld [vmem:[%s1574_s26 + $0x8] sm:$0xff]  ;;  %v176_v8 = vld [vmem:[%s1574_s26 + $0x10] sm:$0xff] }
  0x11   : > { %1222 = vmatprep.mubr.msk.f32.mxu0 %vm194_vm0, %v174_v6  ;;  %v177_v9 = vld [vmem:[%s1574_s26 + $0x18] sm:$0xff]  ;;  %v178_v10 = vld [vmem:[%s1574_s26 + $0x20] sm:$0xff]  ;;  %v179_v11 = vld [vmem:[%s1574_s26 + $0x28] sm:$0xff] }
  0x12   : > { %1223 = vmatmul.mubr.msk.f32.vlgmr.msra.gmra.mrb[0].mxu0 %vm194_vm0, %v175_v7  ;;  %v180_v12 = vld [vmem:[%s1574_s26 + $0x30] sm:$0xff]  ;;  %v181_v13 = vld [vmem:[%s1574_s26 + $0x38] sm:$0xff]  ;;  %v182_v14 = vld [vmem:[%s1574_s26 + $0x40] sm:$0xff] }
  0x13   : > { %1225 = vmatprep.mubr.msk.f32.mxu0 %vm194_vm0, %v176_v8  ;;  %v183_v15 = vld [vmem:[%s1574_s26 + $0x48] sm:$0xff]  ;;  %v184_v16 = vld [vmem:[%s1574_s26 + $0x50] sm:$0xff]  ;;  %v185_v17 = vld [vmem:[%s1574_s26 + $0x58] sm:$0xff] }
  0x14   : > { %v186_v18 = vld [vmem:[%s1574_s26 + $0x60] sm:$0xff]  ;;  %v187_v19 = vld [vmem:[%s1574_s26 + $0x68] sm:$0xff]  ;;  %v188_v20 = vld [vmem:[%s1574_s26 + $0x70] sm:$0xff] }
  0x15   : > { %v189_v21 = vld [vmem:[%s1574_s26 + $0x78] sm:$0xff] }
  0x16   : > { %1226 = vmatmul.mubr.msk.f32.gmra.mrb[2].mxu0 %vm194_vm0, %v177_v9 }
  0x17   : > { %1228 = vmatprep.mubr.msk.f32.mxu0 %vm194_vm0, %v178_v10 }
  0x1a   : > { %1229 = vmatmul.mubr.msk.f32.gmra.mrb[4].mxu0 %vm194_vm0, %v179_v11 }
  0x1b   : > { %1231 = vmatprep.mubr.msk.f32.mxu0 %vm194_vm0, %v180_v12 }
  0x1e   : > { %1232 = vmatmul.mubr.msk.f32.gmra.mrb[6].mxu0 %vm194_vm0, %v181_v13 }
  0x1f   : > { %1234 = vmatprep.mubr.msk.f32.mxu0 %vm194_vm0, %v182_v14  ;;  %v635_v14 = vld [vmem:[%s1824_s2 + $0x28] sm:$0xff] }
  0x22   : > { %1235 = vmatmul.mubr.msk.f32.gmra.mrb[8].mxu0 %vm194_vm0, %v183_v15  ;;  %v636_v15 = vld [vmem:[%s1824_s2 + $0x30] sm:$0xff] }
  0x23   : > { %1237 = vmatprep.mubr.msk.f32.mxu0 %vm194_vm0, %v184_v16 }
  0x26   : > { %1238 = vmatmul.mubr.msk.f32.gmra.mrb[10].mxu0 %vm194_vm0, %v185_v17 }
  0x27   : > { %1240 = vmatprep.mubr.msk.f32.mxu0 %vm194_vm0, %v186_v18 }
  0x2a   : > { %1241 = vmatmul.mubr.msk.f32.gmra.mrb[12].mxu0 %vm194_vm0, %v187_v19 }
  0x2b   : > { %1243 = vmatprep.mubr.msk.f32.mxu0 %vm194_vm0, %v188_v20 }
  0x2e   : > { %1244 = vmatmul.mubr.msk.f32.gmra.mrb[14].mxu0 %vm194_vm0, %v189_v21  ;;  %vm681_vm0 = vcmp.eq.f32.partialorder %v633_v2, 0.0 }
  0xe5   : > { %v1224_v22 = vpop.f32.mrb[0].mxu0 }
  0xe6   : > { %v309_v23 = vpop.f32.mrb[1].mxu0 }
  0xe7   : > { %v1366_v25 = vpack.c.bf16 %v1224_v22, %v309_v23  ;;  %1278 = vmatprep.mubr.msk.f32.mxu1 %vm388_vm1, %v309_v23 }
  0xe9   : > { %1368 = vmatprep.subr.msk.bf16.mxu1 %vm1610_vm2, %v1366_v25  ;;  %1415 = vmatprep.subr.bf16.mxu0 %v1366_v25  ;;  %v1227_v26 = vpop.f32.mrb[2].mxu0 }
  0xea   : > { %1371 = vmatpush3.bf16.xpose.msk.msra.mxu1 %vm1610_vm2, %v1366_v25  ;;  %1417 = vmatpush3.bf16.msra.mxu0 %v1366_v25  ;;  %v319_v27 = vpop.f32.mrb[3].mxu0 }
  0xeb   : > { %v1372_v28 = vpack.c.bf16 %v1227_v26, %v319_v27 }
  0xed   : > { %1419 = vmatprep.subr.bf16.mxu0 %v1372_v28  ;;  %1374 = vmatprep.subr.msk.bf16.mxu1 %vm1610_vm2, %v1372_v28  ;;  %v1230_v29 = vpop.f32.mrb[4].mxu0 }
  0xee   : > { %1421 = vmatpush3.bf16.msra.mxu0 %v1372_v28  ;;  %v329_v30 = vpop.f32.mrb[5].mxu0 }
  0xef   : > { %v1378_v31 = vpack.c.bf16 %v1230_v29, %v329_v30 }
  0xf1   : > { %1423 = vmatprep.subr.bf16.mxu0 %v1378_v31  ;;  %v1233_v32 = vpop.f32.mrb[6].mxu0 }
  0xf2   : > { %1377 = vmatpush3.bf16.xpose.msk.msra.mxu1 %vm1610_vm2, %v1372_v28  ;;  %1425 = vmatpush3.bf16.msra.mxu0 %v1378_v31  ;;  %v339_v33 = vpop.f32.mrb[7].mxu0 }
  0xf3   : > { %1380 = vmatprep.subr.msk.bf16.mxu1 %vm1610_vm2, %v1378_v31  ;;  %v1384_v34 = vpack.c.bf16 %v1233_v32, %v339_v33 }
  0xf5   : > { %1427 = vmatprep.subr.bf16.mxu0 %v1384_v34  ;;  %v1236_v35 = vpop.f32.mrb[8].mxu0 }
  0xf6   : > { %1429 = vmatpush3.bf16.msra.mxu0 %v1384_v34  ;;  %v349_v36 = vpop.f32.mrb[9].mxu0 }
  0xf7   : > { %v1390_v37 = vpack.c.bf16 %v1236_v35, %v349_v36 }
  0xf9   : > { %1431 = vmatprep.subr.bf16.mxu0 %v1390_v37  ;;  %v1239_v38 = vpop.f32.mrb[10].mxu0 }
  0xfa   : > { %1383 = vmatpush3.bf16.xpose.msk.msra.mxu1 %vm1610_vm2, %v1378_v31  ;;  %1433 = vmatpush3.bf16.msra.mxu0 %v1390_v37  ;;  %v359_v39 = vpop.f32.mrb[11].mxu0 }
  0xfb   : > { %1386 = vmatprep.subr.msk.bf16.mxu1 %vm1610_vm2, %v1384_v34  ;;  %v1396_v40 = vpack.c.bf16 %v1239_v38, %v359_v39 }
  0xfd   : > { %1435 = vmatprep.subr.bf16.mxu0 %v1396_v40  ;;  %v1242_v41 = vpop.f32.mrb[12].mxu0 }
  0xfe   : > { %1437 = vmatpush3.bf16.msra.mxu0 %v1396_v40  ;;  %v369_v42 = vpop.f32.mrb[13].mxu0 }
  0xff   : > { %v1402_v43 = vpack.c.bf16 %v1242_v41, %v369_v42 }
 0x101   : > { %1439 = vmatprep.subr.bf16.mxu0 %v1402_v43  ;;  %v1245_v44 = vpop.f32.mrb[14].mxu0 }
 0x102   : > { %1389 = vmatpush3.bf16.xpose.msk.msra.mxu1 %vm1610_vm2, %v1384_v34  ;;  %1441 = vmatpush3.bf16.msra.mxu0 %v1402_v43  ;;  %v379_v45 = vpop.f32.mrb[15].mxu0 }
 0x103   : > { %1392 = vmatprep.subr.msk.bf16.mxu1 %vm1610_vm2, %v1390_v37  ;;  %v1408_v46 = vpack.c.bf16 %v1245_v44, %v379_v45 }
 0x105   : > { %1443 = vmatprep.subr.bf16.mxu0 %v1408_v46 }
 0x106   : > { %1445 = vmatpush3.bf16.msra.mxu0 %v1408_v46 }
 0x10a   : > { %1395 = vmatpush3.bf16.xpose.msk.msra.mxu1 %vm1610_vm2, %v1390_v37 }
 0x10b   : > { %1398 = vmatprep.subr.msk.bf16.mxu1 %vm1610_vm2, %v1396_v40 }
 0x112   : > { %1401 = vmatpush3.bf16.xpose.msk.msra.mxu1 %vm1610_vm2, %v1396_v40 }
 0x113   : > { %1404 = vmatprep.subr.msk.bf16.mxu1 %vm1610_vm2, %v1402_v43 }
 0x11a   : > { %1407 = vmatpush3.bf16.xpose.msk.msra.mxu1 %vm1610_vm2, %v1402_v43 }
 0x11b   : > { %1410 = vmatprep.subr.msk.bf16.mxu1 %vm1610_vm2, %v1408_v46 }
 0x122   : > { %1413 = vmatpush3.bf16.xpose.msk.msra.mxu1 %vm1610_vm2, %v1408_v46  ;;  %vm682_vm2 = vcmp.eq.f32.partialorder %v634_v3, 0.0 }
 0x129   : > { %1279 = vmatmul.mubr.msk.f32.vlgmr.msra.gmra.mrb[0].mxu1 %vm388_vm1, %v1224_v22 }
 0x12a   : > { %1281 = vmatprep.mubr.msk.f32.mxu1 %vm388_vm1, %v319_v27  ;;  %v638_v27 = vld [vmem:[%s1824_s2 + $0x40] sm:$0xff] }
 0x12d   : > { %1282 = vmatmul.mubr.msk.f32.gmra.mrb[2].mxu1 %vm388_vm1, %v1227_v26  ;;  %v637_v26 = vld [vmem:[%s1824_s2 + $0x38] sm:$0xff] }
 0x12e   : > { %1284 = vmatprep.mubr.msk.f32.mxu1 %vm388_vm1, %v329_v30 }
 0x131   : > { %1285 = vmatmul.mubr.msk.f32.gmra.mrb[4].mxu1 %vm388_vm1, %v1230_v29 }
 0x132   : > { %1287 = vmatprep.mubr.msk.f32.mxu1 %vm388_vm1, %v339_v33 }
 0x135   : > { %1288 = vmatmul.mubr.msk.f32.gmra.mrb[6].mxu1 %vm388_vm1, %v1233_v32 }
 0x136   : > { %1290 = vmatprep.mubr.msk.f32.mxu1 %vm388_vm1, %v349_v36 }
 0x139   : > { %1291 = vmatmul.mubr.msk.f32.gmra.mrb[8].mxu1 %vm388_vm1, %v1236_v35 }
 0x13a   : > { %1293 = vmatprep.mubr.msk.f32.mxu1 %vm388_vm1, %v359_v39  ;;  %v640_v39 = vld [vmem:[%s1824_s2 + $0x50] sm:$0xff] }
 0x13d   : > { %1294 = vmatmul.mubr.msk.f32.gmra.mrb[10].mxu1 %vm388_vm1, %v1239_v38  ;;  %v639_v38 = vld [vmem:[%s1824_s2 + $0x48] sm:$0xff] }
 0x13e   : > { %1296 = vmatprep.mubr.msk.f32.mxu1 %vm388_vm1, %v369_v42 }
 0x141   : > { %1297 = vmatmul.mubr.msk.f32.gmra.mrb[12].mxu1 %vm388_vm1, %v1242_v41 }
 0x142   : > { %1299 = vmatprep.mubr.msk.f32.mxu1 %vm388_vm1, %v379_v45 }
 0x145   : > { %1300 = vmatmul.mubr.msk.f32.gmra.mrb[14].mxu1 %vm388_vm1, %v1245_v44 }
 0x1fc   : > { %v1280_v47 = vpop.f32.mrb[0].mxu1 }
 0x1fd   : > { %vm583_vm3 = vcmp.gt.f32.partialorder %v1280_v47, 0.0  ;;  %v599_v48 = vmul.f32 0.1, %v1280_v47  ;;  %v503_v49 = vpop.f32.mrb[1].mxu1 }
 0x1fe   : > { %vm582_vm4 = vcmp.gt.f32.partialorder %v503_v49, 0.0  ;;  %v598_v51 = vmul.f32 0.1, %v503_v49 }
 0x1ff   : > { %v615_v52 = vsel %vm583_vm3, %v1280_v47, %v599_v48 }
 0x200   : > { %v614_v53 = vsel %vm582_vm4, %v503_v49, %v598_v51  ;;  %v1283_v54 = vpop.f32.mrb[2].mxu1  ;;  %vm647_vm8 = vcmp.ne.f32.partialorder %v615_v52, 0.0  ;;  %v642_v51 = vld [vmem:[%s1824_s2 + $0x60] sm:$0xff] }
 0x201   : > { %vm585_vm6 = vcmp.gt.f32.partialorder %v1283_v54, 0.0  ;;  %v601_v57 = vmul.f32 0.1, %v1283_v54  ;;  %v513_v58 = vpop.f32.mrb[3].mxu1  ;;  %vm646_vm7 = vcmp.ne.f32.partialorder %v614_v53, 0.0 }
 0x202   : > { %vm584_vm9 = vcmp.gt.f32.partialorder %v513_v58, 0.0  ;;  %v600_v59 = vmul.f32 0.1, %v513_v58  ;;  %v662_v60 = vsel %vm646_vm7, %v614_v53, -1e+16  ;;  %vm683_vm7 = vcmp.eq.f32.partialorder %v635_v14, 0.0 }
 0x203   : > { %v617_v61 = vsel %vm585_vm6, %v1283_v54, %v601_v57  ;;  %v1671_v62 = vsel %vm678_vm5, %v662_v60, %v630_v50  ;;  %v663_v1 = vsel %vm647_vm8, %v615_v52, -1e+16  ;;  %vm684_vm8 = vcmp.eq.f32.partialorder %v636_v15, 0.0  ;;  %v641_v50 = vld [vmem:[%s1824_s2 + $0x58] sm:$0xff] }
 0x204   : > { %v616_v63 = vsel %vm584_vm9, %v513_v58, %v600_v59  ;;  %710 = vmax.xlane.f32.xlu0 %v1671_v62  ;;  %v1286_v0 = vpop.f32.mrb[4].mxu1  ;;  %vm649_vm14 = vcmp.ne.f32.partialorder %v617_v61, 0.0  ;;  %v1681_v9 = vsel %vm679_vm10, %v663_v1, %v631_v55 }
 0x205   : > { %vm587_vm12 = vcmp.gt.f32.partialorder %v1286_v0, 0.0  ;;  %v603_v4 = vmul.f32 0.1, %v1286_v0  ;;  %v523_v5 = vpop.f32.mrb[5].mxu1  ;;  %vm648_vm13 = vcmp.ne.f32.partialorder %v616_v63, 0.0 }
 0x206   : > { %vm586_vm15 = vcmp.gt.f32.partialorder %v523_v5, 0.0  ;;  %v602_v6 = vmul.f32 0.1, %v523_v5  ;;  %v664_v7 = vsel %vm648_vm13, %v616_v63, -1e+16  ;;  %vm685_vm13 = vcmp.eq.f32.partialorder %v637_v26, 0.0 }
 0x207   : > { %v619_v8 = vsel %vm587_vm12, %v1286_v0, %v603_v4  ;;  %v1683_v10 = vsel %vm680_vm11, %v664_v7, %v632_v56  ;;  %v665_v13 = vsel %vm649_vm14, %v617_v61, -1e+16  ;;  %vm686_vm14 = vcmp.eq.f32.partialorder %v638_v27, 0.0  ;;  %v643_v63 = vld [vmem:[%s1824_s2 + $0x68] sm:$0xff]  ;;  %v644_v0 = vld [vmem:[%s1824_s2 + $0x70] sm:$0xff] }
 0x208   : > { %v618_v11 = vsel %vm586_vm15, %v523_v5, %v602_v6  ;;  %712 = vmax.xlane.f32.xlu0 %v1681_v9  ;;  %714 = vmax.xlane.f32.xlu1 %v1683_v10  ;;  %v1289_v12 = vpop.f32.mrb[6].mxu1  ;;  %vm651_vm5 = vcmp.ne.f32.partialorder %v619_v8, 0.0  ;;  %v1694_v21 = vsel %vm681_vm0, %v665_v13, %v633_v2 }
 0x209   : > { %vm589_vm3 = vcmp.gt.f32.partialorder %v1289_v12, 0.0  ;;  %v605_v16 = vmul.f32 0.1, %v1289_v12  ;;  %v533_v17 = vpop.f32.mrb[7].mxu1  ;;  %vm650_vm4 = vcmp.ne.f32.partialorder %v618_v11, 0.0 }
 0x20a   : > { %vm588_vm6 = vcmp.gt.f32.partialorder %v533_v17, 0.0  ;;  %v604_v18 = vmul.f32 0.1, %v533_v17  ;;  %v666_v19 = vsel %vm650_vm4, %v618_v11, -1e+16  ;;  %vm687_vm4 = vcmp.eq.f32.partialorder %v639_v38, 0.0 }
 0x20b   : > { %v621_v20 = vsel %vm589_vm3, %v1289_v12, %v605_v16  ;;  %v1696_v22 = vsel %vm682_vm2, %v666_v19, %v634_v3  ;;  %v667_v25 = vsel %vm651_vm5, %v619_v8, -1e+16  ;;  %vm688_vm5 = vcmp.eq.f32.partialorder %v640_v39, 0.0  ;;  %v645_v12 = vld [vmem:[%s1824_s2 + $0x78] sm:$0xff] }
 0x20c   : > { %v620_v23 = vsel %vm588_vm6, %v533_v17, %v604_v18  ;;  %716 = vmax.xlane.f32.xlu1 %v1694_v21  ;;  %718 = vmax.xlane.f32.xlu0 %v1696_v22  ;;  %v1292_v24 = vpop.f32.mrb[8].mxu1  ;;  %vm653_vm11 = vcmp.ne.f32.partialorder %v621_v20, 0.0  ;;  %v1707_v33 = vsel %vm683_vm7, %v667_v25, %v635_v14 }
 0x20d   : > { %vm591_vm9 = vcmp.gt.f32.partialorder %v1292_v24, 0.0  ;;  %v607_v28 = vmul.f32 0.1, %v1292_v24  ;;  %v543_v29 = vpop.f32.mrb[9].mxu1  ;;  %vm652_vm10 = vcmp.ne.f32.partialorder %v620_v23, 0.0 }
 0x20e   : > { %vm590_vm12 = vcmp.gt.f32.partialorder %v543_v29, 0.0  ;;  %v606_v30 = vmul.f32 0.1, %v543_v29  ;;  %v668_v31 = vsel %vm652_vm10, %v620_v23, -1e+16  ;;  %vm689_vm10 = vcmp.eq.f32.partialorder %v641_v50, 0.0 }
 0x20f   : > { %v623_v32 = vsel %vm591_vm9, %v1292_v24, %v607_v28  ;;  %v1709_v34 = vsel %vm684_vm8, %v668_v31, %v636_v15  ;;  %v669_v37 = vsel %vm653_vm11, %v621_v20, -1e+16  ;;  %vm690_vm11 = vcmp.eq.f32.partialorder %v642_v51, 0.0 }
 0x210   : > { %v622_v35 = vsel %vm590_vm12, %v543_v29, %v606_v30  ;;  %720 = vmax.xlane.f32.xlu1 %v1707_v33  ;;  %722 = vmax.xlane.f32.xlu0 %v1709_v34  ;;  %v1295_v36 = vpop.f32.mrb[10].mxu1  ;;  %vm655_vm2 = vcmp.ne.f32.partialorder %v623_v32, 0.0  ;;  %v1720_v45 = vsel %vm685_vm13, %v669_v37, %v637_v26 }
 0x211   : > { %vm593_vm15 = vcmp.gt.f32.partialorder %v1295_v36, 0.0  ;;  %v609_v40 = vmul.f32 0.1, %v1295_v36  ;;  %v553_v41 = vpop.f32.mrb[11].mxu1  ;;  %vm654_vm0 = vcmp.ne.f32.partialorder %v622_v35, 0.0 }
 0x212   : > { %vm592_vm3 = vcmp.gt.f32.partialorder %v553_v41, 0.0  ;;  %v608_v42 = vmul.f32 0.1, %v553_v41  ;;  %v670_v43 = vsel %vm654_vm0, %v622_v35, -1e+16  ;;  %vm691_vm0 = vcmp.eq.f32.partialorder %v643_v63, 0.0 }
 0x213   : > { %v625_v44 = vsel %vm593_vm15, %v1295_v36, %v609_v40  ;;  %v1722_v46 = vsel %vm686_vm14, %v670_v43, %v638_v27  ;;  %v671_v49 = vsel %vm655_vm2, %v623_v32, -1e+16  ;;  %vm692_vm2 = vcmp.eq.f32.partialorder %v644_v0, 0.0 }
 0x214   : > { %v624_v47 = vsel %vm592_vm3, %v553_v41, %v608_v42  ;;  %724 = vmax.xlane.f32.xlu1 %v1720_v45  ;;  %726 = vmax.xlane.f32.xlu0 %v1722_v46  ;;  %v1298_v48 = vpop.f32.mrb[12].mxu1  ;;  %vm657_vm8 = vcmp.ne.f32.partialorder %v625_v44, 0.0  ;;  %v1733_v57 = vsel %vm687_vm4, %v671_v49, %v639_v38 }
 0x215   : > { %vm595_vm6 = vcmp.gt.f32.partialorder %v1298_v48, 0.0  ;;  %v611_v52 = vmul.f32 0.1, %v1298_v48  ;;  %v563_v53 = vpop.f32.mrb[13].mxu1  ;;  %vm656_vm7 = vcmp.ne.f32.partialorder %v624_v47, 0.0 }
 0x216   : > { %vm594_vm9 = vcmp.gt.f32.partialorder %v563_v53, 0.0  ;;  %v610_v54 = vmul.f32 0.1, %v563_v53  ;;  %v672_v55 = vsel %vm656_vm7, %v624_v47, -1e+16 }
 0x217   : > { %v627_v56 = vsel %vm595_vm6, %v1298_v48, %v611_v52  ;;  %v1735_v58 = vsel %vm688_vm5, %v672_v55, %v640_v39  ;;  %v673_v61 = vsel %vm657_vm8, %v625_v44, -1e+16  ;;  %vm693_vm5 = vcmp.eq.f32.partialorder %v645_v12, 0.0 }
 0x218   : > { %v626_v59 = vsel %vm594_vm9, %v563_v53, %v610_v54  ;;  %728 = vmax.xlane.f32.xlu1 %v1733_v57  ;;  %730 = vmax.xlane.f32.xlu0 %v1735_v58  ;;  %v1301_v60 = vpop.f32.mrb[14].mxu1  ;;  %vm659_vm14 = vcmp.ne.f32.partialorder %v627_v56, 0.0  ;;  %v1746_v6 = vsel %vm689_vm10, %v673_v61, %v641_v50 }
 0x219   : > { %vm597_vm12 = vcmp.gt.f32.partialorder %v1301_v60, 0.0  ;;  %v613_v1 = vmul.f32 0.1, %v1301_v60  ;;  %v573_v2 = vpop.f32.mrb[15].mxu1  ;;  %vm658_vm13 = vcmp.ne.f32.partialorder %v626_v59, 0.0 }
 0x21a   : > { %vm596_vm15 = vcmp.gt.f32.partialorder %v573_v2, 0.0  ;;  %v612_v3 = vmul.f32 0.1, %v573_v2  ;;  %v674_v4 = vsel %vm658_vm13, %v626_v59, -1e+16 }
 0x21b   : > { %v629_v5 = vsel %vm597_vm12, %v1301_v60, %v613_v1  ;;  %v1748_v7 = vsel %vm690_vm11, %v674_v4, %v642_v51  ;;  %v675_v11 = vsel %vm659_vm14, %v627_v56, -1e+16 }
 0x21c   : > { %v628_v8 = vsel %vm596_vm15, %v573_v2, %v612_v3  ;;  %732 = vmax.xlane.f32.xlu1 %v1746_v6  ;;  %734 = vmax.xlane.f32.xlu0 %v1748_v7  ;;  %vm661_vm4 = vcmp.ne.f32.partialorder %v629_v5, 0.0  ;;  %v1755_v14 = vsel %vm691_vm0, %v675_v11, %v643_v63 }
 0x21d   : > { %vm660_vm3 = vcmp.ne.f32.partialorder %v628_v8, 0.0  ;;  %v677_v16 = vsel %vm661_vm4, %v629_v5, -1e+16 }
 0x21e   : > { %v676_v13 = vsel %vm660_vm3, %v628_v8, -1e+16  ;;  %v1761_v17 = vsel %vm693_vm5, %v677_v16, %v645_v12 }
 0x21f   : > { %v1757_v15 = vsel %vm692_vm2, %v676_v13, %v644_v0 }
 0x220   : > { %736 = vmax.xlane.f32.xlu1 %v1755_v14  ;;  %738 = vmax.xlane.f32.xlu0 %v1757_v15 }
 0x224   : > { %740 = vmax.xlane.f32.xlu1 %v1761_v17 }
 0x291   : > { %v711_v18 = vpop.xlane.xlu0 %710 }
 0x292   : > { %v742_v19 = vsub.f32 %v1671_v62, %v711_v18 }
 0x294   : > { %v758_v20 = vmul.f32 1.442695, %v742_v19 }
 0x295   : > { %v713_v23 = vpop.xlane.xlu0 %712  ;;  %v715_v24 = vpop.xlane.xlu1 %714 }
 0x296   : > { %1454 = vpow2.f32 %v758_v20  ;;  %v743_v25 = vsub.f32 %v1681_v9, %v713_v23  ;;  %v744_v26 = vsub.f32 %v1683_v10, %v715_v24 }
 0x298   : > { %v760_v27 = vmul.f32 1.442695, %v743_v25  ;;  %v762_v28 = vmul.f32 1.442695, %v744_v26 }
 0x299   : > { %v717_v29 = vpop.xlane.xlu1 %716  ;;  %v719_v30 = vpop.xlane.xlu0 %718 }
 0x29a   : > { %1456 = vpow2.f32 %v760_v27  ;;  %v745_v31 = vsub.f32 %v1694_v21, %v717_v29  ;;  %v746_v32 = vsub.f32 %v1696_v22, %v719_v30 }
 0x29b   : > { %1458 = vpow2.f32 %v762_v28 }
 0x29c   : > { %v764_v35 = vmul.f32 1.442695, %v745_v31  ;;  %v766_v62 = vmul.f32 1.442695, %v746_v32 }
 0x29d   : > { %v721_v36 = vpop.xlane.xlu1 %720  ;;  %v723_v37 = vpop.xlane.xlu0 %722 }
 0x29e   : > { %1460 = vpow2.f32 %v764_v35  ;;  %v747_v38 = vsub.f32 %v1707_v33, %v721_v36  ;;  %v748_v9 = vsub.f32 %v1709_v34, %v723_v37 }
 0x29f   : > { %1462 = vpow2.f32 %v766_v62 }
 0x2a0   : > { %v1455_v10 = vpop.eup %1454  ;;  %v768_v39 = vmul.f32 1.442695, %v747_v38  ;;  %v770_v40 = vmul.f32 1.442695, %v748_v9 }
 0x2a1   : > { %1334 = vmatprep.mubr.f32.mxu0 %v1455_v10  ;;  %v725_v41 = vpop.xlane.xlu1 %724  ;;  %v727_v42 = vpop.xlane.xlu0 %726  ;;  %790 = vadd.xlane.f32.xlu0 %v1455_v10 }
 0x2a2   : > { %1464 = vpow2.f32 %v768_v39  ;;  %v749_v21 = vsub.f32 %v1720_v45, %v725_v41  ;;  %v750_v22 = vsub.f32 %v1722_v46, %v727_v42 }
 0x2a3   : > { %1466 = vpow2.f32 %v770_v40 }
 0x2a4   : > { %v1457_v43 = vpop.eup %1456  ;;  %v772_v44 = vmul.f32 1.442695, %v749_v21  ;;  %v774_v47 = vmul.f32 1.442695, %v750_v22 }
 0x2a5   : > { %v1459_v33 = vpop.eup %1458  ;;  %1335 = vmatmul.mubr.f32.vlgmr.msra.gmra.mrb[16].mxu0 %v1457_v43  ;;  %v729_v34 = vpop.xlane.xlu1 %728  ;;  %792 = vadd.xlane.f32.xlu1 %v1457_v43 }
 0x2a6   : > { %v731_v48 = vpop.xlane.xlu0 %730  ;;  %1468 = vpow2.f32 %v772_v44  ;;  %v751_v49 = vsub.f32 %v1733_v57, %v729_v34  ;;  %794 = vadd.xlane.f32.xlu0 %v1459_v33  ;;  %1337 = vmatprep.mubr.f32.mxu0 %v1459_v33 }
 0x2a7   : > { %v752_v50 = vsub.f32 %v1735_v58, %v731_v48  ;;  %1470 = vpow2.f32 %v774_v47 }
 0x2a8   : > { %v1461_v45 = vpop.eup %1460  ;;  %v776_v51 = vmul.f32 1.442695, %v751_v49 }
 0x2a9   : > { %v778_v46 = vmul.f32 1.442695, %v752_v50  ;;  %v1463_v52 = vpop.eup %1462  ;;  %1338 = vmatmul.mubr.f32.gmra.mrb[18].mxu0 %v1461_v45  ;;  %v733_v53 = vpop.xlane.xlu1 %732  ;;  %796 = vadd.xlane.f32.xlu1 %v1461_v45 }
 0x2aa   : > { %v735_v54 = vpop.xlane.xlu0 %734  ;;  %1472 = vpow2.f32 %v776_v51  ;;  %v753_v55 = vsub.f32 %v1746_v6, %v733_v53  ;;  %798 = vadd.xlane.f32.xlu0 %v1463_v52  ;;  %1340 = vmatprep.mubr.f32.mxu0 %v1463_v52 }
 0x2ab   : > { %v754_v56 = vsub.f32 %v1748_v7, %v735_v54  ;;  %1474 = vpow2.f32 %v778_v46 }
 0x2ac   : > { %v1465_v57 = vpop.eup %1464  ;;  %v780_v58 = vmul.f32 1.442695, %v753_v55 }
 0x2ad   : > { %v782_v59 = vmul.f32 1.442695, %v754_v56  ;;  %v1467_v60 = vpop.eup %1466  ;;  %1341 = vmatmul.mubr.f32.gmra.mrb[20].mxu0 %v1465_v57  ;;  %v737_v61 = vpop.xlane.xlu1 %736  ;;  %800 = vadd.xlane.f32.xlu1 %v1465_v57 }
 0x2ae   : > { %v739_v63 = vpop.xlane.xlu0 %738  ;;  %1476 = vpow2.f32 %v780_v58  ;;  %v755_v0 = vsub.f32 %v1755_v14, %v737_v61  ;;  %802 = vadd.xlane.f32.xlu0 %v1467_v60  ;;  %1343 = vmatprep.mubr.f32.mxu0 %v1467_v60 }
 0x2af   : > { %v756_v1 = vsub.f32 %v1757_v15, %v739_v63  ;;  %1478 = vpow2.f32 %v782_v59 }
 0x2b0   : > { %v1469_v2 = vpop.eup %1468  ;;  %v784_v3 = vmul.f32 1.442695, %v755_v0 }
 0x2b1   : > { %v786_v4 = vmul.f32 1.442695, %v756_v1  ;;  %v1471_v5 = vpop.eup %1470  ;;  %1344 = vmatmul.mubr.f32.gmra.mrb[22].mxu0 %v1469_v2  ;;  %804 = vadd.xlane.f32.xlu1 %v1469_v2  ;;  %v741_v6 = vpop.xlane.xlu1 %740 }
 0x2b2   : > { %1480 = vpow2.f32 %v784_v3  ;;  %v757_v7 = vsub.f32 %v1761_v17, %v741_v6  ;;  %806 = vadd.xlane.f32.xlu0 %v1471_v5  ;;  %1346 = vmatprep.mubr.f32.mxu0 %v1471_v5 }
 0x2b3   : > { %1482 = vpow2.f32 %v786_v4 }
 0x2b4   : > { %v1473_v8 = vpop.eup %1472  ;;  %v788_v11 = vmul.f32 1.442695, %v757_v7 }
 0x2b5   : > { %v1475_v12 = vpop.eup %1474  ;;  %1347 = vmatmul.mubr.f32.gmra.mrb[24].mxu0 %v1473_v8  ;;  %808 = vadd.xlane.f32.xlu1 %v1473_v8 }
 0x2b6   : > { %1484 = vpow2.f32 %v788_v11  ;;  %810 = vadd.xlane.f32.xlu0 %v1475_v12  ;;  %1349 = vmatprep.mubr.f32.mxu0 %v1475_v12 }
 0x2b8   : > { %v1477_v13 = vpop.eup %1476 }
 0x2b9   : > { %v1479_v14 = vpop.eup %1478  ;;  %1350 = vmatmul.mubr.f32.gmra.mrb[26].mxu0 %v1477_v13  ;;  %812 = vadd.xlane.f32.xlu1 %v1477_v13 }
 0x2ba   : > { %814 = vadd.xlane.f32.xlu0 %v1479_v14  ;;  %1352 = vmatprep.mubr.f32.mxu0 %v1479_v14 }
 0x2bc   : > { %v1481_v15 = vpop.eup %1480 }
 0x2bd   : > { %v1483_v16 = vpop.eup %1482  ;;  %1353 = vmatmul.mubr.f32.gmra.mrb[28].mxu0 %v1481_v15  ;;  %816 = vadd.xlane.f32.xlu1 %v1481_v15 }
 0x2be   : > { %818 = vadd.xlane.f32.xlu0 %v1483_v16  ;;  %1355 = vmatprep.mubr.f32.mxu0 %v1483_v16 }
 0x2c0   : > { %v1485_v17 = vpop.eup %1484 }
 0x2c1   : > { %820 = vadd.xlane.f32.xlu1 %v1485_v17  ;;  %1356 = vmatmul.mubr.f32.gmra.mrb[30].mxu0 %v1485_v17 }
 0x32e   : > { %v791_v19 = vpop.xlane.xlu0 %790 }
 0x332   : > { %v793_v18 = vpop.xlane.xlu1 %792 }
 0x333   : > { %v795_v23 = vpop.xlane.xlu0 %794  ;;  %1486 = vrcp.f32 %v793_v18 }
 0x334   : > { %1488 = vrcp.f32 %v791_v19 }
 0x336   : > { %v797_v20 = vpop.xlane.xlu1 %796 }
 0x337   : > { %v799_v25 = vpop.xlane.xlu0 %798  ;;  %1490 = vrcp.f32 %v797_v20 }
 0x338   : > { %1492 = vrcp.f32 %v795_v23 }
 0x33a   : > { %v801_v24 = vpop.xlane.xlu1 %800 }
 0x33b   : > { %v803_v27 = vpop.xlane.xlu0 %802  ;;  %1494 = vrcp.f32 %v801_v24 }
 0x33c   : > { %1496 = vrcp.f32 %v799_v25 }
 0x33d   : > { %v1487_v30 = vpop.eup %1486 }
 0x33e   : > { %v805_v26 = vpop.xlane.xlu1 %804  ;;  %v1489_v32 = vpop.eup %1488 }
 0x33f   : > { %v807_v29 = vpop.xlane.xlu0 %806  ;;  %1498 = vrcp.f32 %v805_v26 }
 0x340   : > { %1500 = vrcp.f32 %v803_v27 }
 0x341   : > { %v1491_v38 = vpop.eup %1490 }
 0x342   : > { %v809_v28 = vpop.xlane.xlu1 %808  ;;  %v1493_v39 = vpop.eup %1492 }
 0x343   : > { %v811_v9 = vpop.xlane.xlu0 %810  ;;  %1502 = vrcp.f32 %v809_v28 }
 0x344   : > { %1504 = vrcp.f32 %v807_v29 }
 0x345   : > { %v1495_v21 = vpop.eup %1494 }
 0x346   : > { %v813_v37 = vpop.xlane.xlu1 %812  ;;  %v1497_v43 = vpop.eup %1496 }
 0x347   : > { %1506 = vrcp.f32 %v813_v37  ;;  %v815_v34 = vpop.xlane.xlu0 %814 }
 0x348   : > { %1508 = vrcp.f32 %v811_v9 }
 0x349   : > { %v1499_v49 = vpop.eup %1498 }
 0x34a   : > { %v817_v44 = vpop.xlane.xlu1 %816  ;;  %v1501_v45 = vpop.eup %1500 }
 0x34b   : > { %1510 = vrcp.f32 %v817_v44  ;;  %v819_v55 = vpop.xlane.xlu0 %818 }
 0x34c   : > { %1512 = vrcp.f32 %v815_v34 }
 0x34d   : > { %v1503_v54 = vpop.eup %1502 }
 0x34e   : > { %v821_v53 = vpop.xlane.xlu1 %820  ;;  %v1505_v57 = vpop.eup %1504 }
 0x34f   : > { %1514 = vrcp.f32 %v821_v53 }
 0x350   : > { %1516 = vrcp.f32 %v819_v55 }
 0x351   : > { %v1507_v61 = vpop.eup %1506 }
 0x352   : > { %v1509_v0 = vpop.eup %1508 }
 0x355   : > { %v1511_v4 = vpop.eup %1510 }
 0x356   : > { %v1513_v6 = vpop.eup %1512 }
 0x359   : > { %v1515_v12 = vpop.eup %1514 }
 0x35a   : > { %v1517_v14 = vpop.eup %1516 }
 0x378   : > { %v1336_v31 = vpop.f32.mrb[16].mxu0 }
 0x379   : > { %v984_v35 = vmul.f32 %v1487_v30, %v1336_v31  ;;  %v888_v62 = vpop.f32.mrb[17].mxu0 }
 0x37a   : > { %v983_v36 = vmul.f32 %v1489_v32, %v888_v62 }
 0x37b   : > { %1000 = vst.msk [vmem:[%s1785_s10 + $0x8] sm:$0xff] %vm388_vm1, %v984_v35 }
 0x37c   : > { %999 = vst.msk [vmem:[%s1785_s10] sm:$0xff] %vm388_vm1, %v983_v36  ;;  %v1339_v10 = vpop.f32.mrb[18].mxu0 }
 0x37d   : > { %v986_v40 = vmul.f32 %v1491_v38, %v1339_v10  ;;  %v898_v41 = vpop.f32.mrb[19].mxu0 }
 0x37e   : > { %v985_v42 = vmul.f32 %v1493_v39, %v898_v41 }
 0x37f   : > { %1002 = vst.msk [vmem:[%s1785_s10 + $0x18] sm:$0xff] %vm388_vm1, %v986_v40 }
 0x380   : > { %1001 = vst.msk [vmem:[%s1785_s10 + $0x10] sm:$0xff] %vm388_vm1, %v985_v42  ;;  %v1342_v22 = vpop.f32.mrb[20].mxu0 }
 0x381   : > { %v988_v47 = vmul.f32 %v1495_v21, %v1342_v22  ;;  %v908_v33 = vpop.f32.mrb[21].mxu0 }
 0x382   : > { %v987_v48 = vmul.f32 %v1497_v43, %v908_v33 }
 0x383   : > { %1004 = vst.msk [vmem:[%s1785_s10 + $0x28] sm:$0xff] %vm388_vm1, %v988_v47 }
 0x384   : > { %1003 = vst.msk [vmem:[%s1785_s10 + $0x20] sm:$0xff] %vm388_vm1, %v987_v48  ;;  %v1345_v50 = vpop.f32.mrb[22].mxu0 }
 0x385   : > { %v990_v51 = vmul.f32 %v1499_v49, %v1345_v50  ;;  %v918_v46 = vpop.f32.mrb[23].mxu0 }
 0x386   : > { %v989_v52 = vmul.f32 %v1501_v45, %v918_v46 }
 0x387   : > { %1006 = vst.msk [vmem:[%s1785_s10 + $0x38] sm:$0xff] %vm388_vm1, %v990_v51 }
 0x388   : > { %1005 = vst.msk [vmem:[%s1785_s10 + $0x30] sm:$0xff] %vm388_vm1, %v989_v52  ;;  %v1348_v56 = vpop.f32.mrb[24].mxu0 }
 0x389   : > { %v992_v58 = vmul.f32 %v1503_v54, %v1348_v56  ;;  %v928_v59 = vpop.f32.mrb[25].mxu0 }
 0x38a   : > { %v991_v60 = vmul.f32 %v1505_v57, %v928_v59 }
 0x38b   : > { %1008 = vst.msk [vmem:[%s1785_s10 + $0x48] sm:$0xff] %vm388_vm1, %v992_v58 }
 0x38c   : > { %1007 = vst.msk [vmem:[%s1785_s10 + $0x40] sm:$0xff] %vm388_vm1, %v991_v60  ;;  %v1351_v63 = vpop.f32.mrb[26].mxu0 }
 0x38d   : > { %v994_v1 = vmul.f32 %v1507_v61, %v1351_v63  ;;  %v938_v2 = vpop.f32.mrb[27].mxu0 }
 0x38e   : > { %v993_v3 = vmul.f32 %v1509_v0, %v938_v2 }
 0x38f   : > { %1010 = vst.msk [vmem:[%s1785_s10 + $0x58] sm:$0xff] %vm388_vm1, %v994_v1 }
 0x390   : > { %1009 = vst.msk [vmem:[%s1785_s10 + $0x50] sm:$0xff] %vm388_vm1, %v993_v3  ;;  %v1354_v5 = vpop.f32.mrb[28].mxu0 }
 0x391   : > { %v996_v7 = vmul.f32 %v1511_v4, %v1354_v5  ;;  %v948_v8 = vpop.f32.mrb[29].mxu0 }
 0x392   : > { %v995_v11 = vmul.f32 %v1513_v6, %v948_v8 }
 0x393   : > { %1012 = vst.msk [vmem:[%s1785_s10 + $0x68] sm:$0xff] %vm388_vm1, %v996_v7 }
 0x394   : > { %1011 = vst.msk [vmem:[%s1785_s10 + $0x60] sm:$0xff] %vm388_vm1, %v995_v11  ;;  %v1357_v13 = vpop.f32.mrb[30].mxu0 }
 0x395   : > { %v998_v15 = vmul.f32 %v1515_v12, %v1357_v13  ;;  %v958_v16 = vpop.f32.mrb[31].mxu0 }
 0x396   : > { %v997_v17 = vmul.f32 %v1517_v14, %v958_v16 }
 0x397   : > { %1014 = vst.msk [vmem:[%s1785_s10 + $0x78] sm:$0xff] %vm388_vm1, %v998_v15 }
 0x398   : > { %1013 = vst.msk [vmem:[%s1785_s10 + $0x70] sm:$0xff] %vm388_vm1, %v997_v17 }
 0x399 PF: > { %s13_s12 = sadd.s32 1, %s1524_s12  }
 0x39a   : > { %p10_p4 = scmp.ge.s32.totalorder %s13_s12, 4  }
 0x39c   :  { %12 = sbr.rel (!%p10_p4) target bundleno = 1 (0x1), region = 62 }

</bundles_post_ra>
